<compile_context>
chip_gen: v5e
topology: v5e:2x2
jax: 0.10.0
libtpu: 0.0.40
codegen_flags: <defaults>
</compile_context>

<pallas_src>
import jax
import jax.numpy as jnp
from jax import lax
from jax.experimental import pallas as pl
from jax.experimental.pallas import tpu as pltpu


def ecc_kernel(tgt_ref, cnt_in_ref, tgt2d_ref, feat_ref, logit_ref,
               ft_in_ref, lt_in_ref,
               loss_ref, ft_out_ref, lt_out_ref, cnt_out_ref):
    B, D = feat_ref.shape
    N = lt_in_ref.shape[0]
    f32 = jnp.float32
    HIGH = lax.Precision.HIGHEST
    eps = f32(1e-8)

    # Tables are updated in place in the output refs (aliased with the inputs
    # at the HBM level; the VMEM output block still needs an explicit init).
    ft_out_ref[...] = ft_in_ref[...]
    lt_out_ref[...] = lt_in_ref[...]

    # Copy per-class count into the SMEM output ref (working buffer).
    def copy_cnt(j, _):
        cnt_out_ref[j] = cnt_in_ref[j]
        return 0
    lax.fori_loop(0, N, copy_cnt, 0)

    # ---- Phase 1: sequential running-mean update, row-granular access ------
    def update_body(i, _):
        idx = tgt_ref[i]                       # SMEM scalar (class id)
        c = cnt_out_ref[idx]                   # SMEM scalar count
        c1 = c + 1.0
        f_row = ft_out_ref[pl.ds(idx, 1), :]   # (1, D)
        l_row = lt_out_ref[pl.ds(idx, 1), :]   # (1, N)
        f_i = feat_ref[pl.ds(i, 1), :]         # (1, D)
        l_i = logit_ref[pl.ds(i, 1), :]        # (1, N)
        ft_out_ref[pl.ds(idx, 1), :] = (f_row * c + f_i) / c1
        lt_out_ref[pl.ds(idx, 1), :] = (l_row * c + l_i) / c1
        cnt_out_ref[idx] = c1
        return 0
    lax.fori_loop(0, B, update_body, 0)

    ft = ft_out_ref[...]      # updated feature table (N, D)
    lt = lt_out_ref[...]      # updated logit table   (N, N)
    feat = feat_ref[...]      # (B, D)
    logit = logit_ref[...]    # (B, N)

    # ---- Phase 2: normalized class-vs-class cosine table --------------------
    inv_nrm = lax.rsqrt(jnp.maximum(jnp.sum(ft * ft, axis=1, keepdims=True), eps))
    ftn = ft * inv_nrm                                               # rows L2-normalized
    sim = lax.dot_general(ftn, ftn, (((1,), (1,)), ((), ())),
                          precision=HIGH, preferred_element_type=f32)  # (N, N)
    tmin = jnp.min(sim)
    tmax = jnp.max(sim)
    sim = (sim - tmin) / (tmax - tmin)
    nrow_nn = lax.broadcasted_iota(jnp.int32, (N, N), 0)
    ncol_nn = lax.broadcasted_iota(jnp.int32, (N, N), 1)
    sim = jnp.where(nrow_nn == ncol_nn, 0.0, sim)                    # zero diagonal
    scv = jnp.max(sim, axis=1, keepdims=True)                        # (N,1) most-similar value
    # index of FIRST row-max (same tie rule as torch.max(dim=1))
    first_idx = jnp.min(jnp.where(sim == scv, ncol_nn, N),
                        axis=1, keepdims=True).astype(f32)           # (N,1)
    aux = jnp.concatenate((scv, first_idx), axis=1)                  # (N,2)

    # ---- Phase 3: batched per-sample losses (one-hot gathers, no loop) ------
    col_bn = lax.broadcasted_iota(jnp.int32, (B, N), 1)
    tgt2d = tgt2d_ref[...]                                           # (B,1) int32
    oh_t = (col_bn == tgt2d).astype(f32)                             # (B,N) one-hot(targets)
    # HIGHEST precision => bit-exact row gathers through the MXU.
    tf = lax.dot_general(oh_t, ft, (((1,), (0,)), ((), ())),
                         precision=HIGH, preferred_element_type=f32)   # (B,D) target feature
    tl = lax.dot_general(oh_t, lt, (((1,), (0,)), ((), ())),
                         precision=HIGH, preferred_element_type=f32)   # (B,N) target logit
    aux_b = lax.dot_general(oh_t, aux, (((1,), (0,)), ((), ())),
                            precision=HIGH, preferred_element_type=f32)  # (B,2)
    stv = aux_b[:, 0:1]                                                # (B,1) similar_target_value
    sci = aux_b[:, 1:2]                                                # (B,1) similar class id (f32)
    oh_s = (col_bn == sci.astype(jnp.int32)).astype(f32)               # (B,N)
    sf = lax.dot_general(oh_s, ft, (((1,), (0,)), ((), ())),
                         precision=HIGH, preferred_element_type=f32)   # (B,D) similar class feature

    nb = jnp.sqrt(jnp.sum(feat * feat, axis=1, keepdims=True))       # (B,1)
    na = jnp.sqrt(jnp.sum(tf * tf, axis=1, keepdims=True))
    ns = jnp.sqrt(jnp.sum(sf * sf, axis=1, keepdims=True))
    cos1 = jnp.sum(tf * feat, axis=1, keepdims=True) / jnp.maximum(na * nb, eps)
    cos2 = jnp.sum(sf * feat, axis=1, keepdims=True) / jnp.maximum(ns * nb, eps)
    fc = jnp.sum(1.0 - cos1)
    # torch broadcast quirk: (B,) * (B,1) -> (B,B) then .sum() == sum(cos)*sum(scv)
    intra = jnp.sum(cos2) * jnp.sum(stv)

    # KL(softmax(target_logit) || softmax(logits)), reduction='sum', batched
    mp = jnp.max(logit, axis=1, keepdims=True)
    logp = logit - (mp + jnp.log(jnp.sum(jnp.exp(logit - mp), axis=1, keepdims=True)))
    mq = jnp.max(tl, axis=1, keepdims=True)
    logq = tl - (mq + jnp.log(jnp.sum(jnp.exp(tl - mq), axis=1, keepdims=True)))
    q = jnp.exp(logq)
    kl = jnp.sum(q * (logq - logp))

    col2 = lax.broadcasted_iota(jnp.int32, (1, 2), 1)
    loss_ref[...] = jnp.where(col2 == 0, fc + intra, kl).astype(f32)


def ecc_loss_pallas(feature, logits, targets, feature_table, logit_table, count):
    B, D = feature.shape
    N = feature_table.shape[0]
    vmem = pltpu.MemorySpace.VMEM
    smem = pltpu.MemorySpace.SMEM
    targets = targets.astype(jnp.int32)
    tgt2d = targets.reshape(B, 1)
    cnt_flat = count.reshape(N).astype(jnp.float32)

    loss, ft_new, lt_new, cnt_new = pl.pallas_call(
        ecc_kernel,
        out_shape=(
            jax.ShapeDtypeStruct((1, 2), jnp.float32),   # [loss1, loss2]
            jax.ShapeDtypeStruct((N, D), jnp.float32),   # updated feature_table
            jax.ShapeDtypeStruct((N, N), jnp.float32),   # updated logit_table
            jax.ShapeDtypeStruct((N,), jnp.float32),     # updated count
        ),
        in_specs=[
            pl.BlockSpec(memory_space=smem),   # targets (B,) int32
            pl.BlockSpec(memory_space=smem),   # count   (N,)  f32
            pl.BlockSpec(memory_space=vmem),   # targets (B,1) int32
            pl.BlockSpec(memory_space=vmem),   # feature (B,D)
            pl.BlockSpec(memory_space=vmem),   # logits  (B,N)
            pl.BlockSpec(memory_space=vmem),   # feature_table (N,D)
            pl.BlockSpec(memory_space=vmem),   # logit_table   (N,N)
        ],
        out_specs=(
            pl.BlockSpec(memory_space=vmem),
            pl.BlockSpec(memory_space=vmem),
            pl.BlockSpec(memory_space=vmem),
            pl.BlockSpec(memory_space=smem),
        ),
        # feature_table -> ft_new, logit_table -> lt_new (in-place semantics)
        input_output_aliases={5: 1, 6: 2},
    )(targets, cnt_flat, tgt2d, feature, logits, feature_table, logit_table)

    return loss[0, 0], loss[0, 1], ft_new, lt_new, cnt_new.reshape(N, 1)


# ---------------- pure-JAX reference (mirrors the PyTorch forward) ----------
def ecc_reference(feature, logits, targets, ft, lt, cnt):
    B = feature.shape[0]
    cnt = cnt[:, 0]
    for i in range(B):
        idx = int(targets[i])
        ft = ft.at[idx].set(ft[idx] * cnt[idx] + feature[i])
        lt = lt.at[idx].set(lt[idx] * cnt[idx] + logits[i])
        cnt = cnt.at[idx].set(cnt[idx] + 1.0)
        ft = ft.at[idx].set(ft[idx] / cnt[idx])
        lt = lt.at[idx].set(lt[idx] / cnt[idx])

    def cos(a, b):
        return jnp.sum(a * b, -1) / jnp.maximum(
            jnp.linalg.norm(a, axis=-1) * jnp.linalg.norm(b, axis=-1), 1e-8)

    tf = ft[targets]
    fc = jnp.sum(1.0 - cos(tf, feature))
    na = jnp.linalg.norm(ft, axis=-1)
    sim = (ft @ ft.T) / na[:, None] / na[None, :]
    sim = (sim - sim.min()) / (sim.max() - sim.min())
    sim = sim - jnp.diag(jnp.diag(sim))
    scv = sim.max(axis=1)
    sci = jnp.argmax(sim, axis=1)
    scf = ft[sci]
    stv = scv[targets].reshape(-1, 1)
    intra = jnp.sum(cos(feature, scf[targets])[None, :] * stv)   # torch (B,)*(B,1) broadcast
    tl = lt[targets]
    logp = jax.nn.log_softmax(logits, axis=1)
    q = jax.nn.softmax(tl, axis=1)
    kl = jnp.sum(q * (jnp.log(q) - logp))
    return fc + intra, kl, ft, lt, cnt.reshape(-1, 1)


if __name__ == "__main__":
    key = jax.random.PRNGKey(0)
    B, N, D = 4, 8, 128         # batch, num_class, dim
    k1, k2, k3, k4 = jax.random.split(key, 4)
    feature = jax.random.normal(k1, (B, D), dtype=jnp.float32)
    logits = jax.random.normal(k2, (B, N), dtype=jnp.float32)
    targets = jnp.array([1, 3, 1, 6], dtype=jnp.int32)   # repeated class exercises the sequential update
    # deterministic stand-ins for the torch.rand buffers in __init__
    feature_table = jax.random.uniform(k3, (N, D), dtype=jnp.float32)
    logit_table = jax.random.uniform(k4, (N, N), dtype=jnp.float32)
    count = jnp.zeros((N, 1), dtype=jnp.float32)

    # Reference first (kernel tables are aliased; keep the comparison clean).
    r1, r2, rft, rlt, rcnt = ecc_reference(feature, logits, targets,
                                           feature_table, logit_table, count)

    run = jax.jit(ecc_loss_pallas)
    loss1, loss2, ft_new, lt_new, cnt_new = run(feature, logits, targets,
                                                feature_table, logit_table, count)
    jax.block_until_ready((loss1, loss2, ft_new, lt_new, cnt_new))

    assert jnp.allclose(loss1, r1, rtol=1e-3, atol=1e-3), (loss1, r1)
    assert jnp.allclose(loss2, r2, rtol=1e-3, atol=1e-3), (loss2, r2)
    assert jnp.allclose(ft_new, rft, rtol=1e-4, atol=1e-4)
    assert jnp.allclose(lt_new, rlt, rtol=1e-4, atol=1e-4)
    assert jnp.allclose(cnt_new, rcnt, atol=1e-6)
    print("KERNEL_OK")
</pallas_src>

<mosaic_0001>
module attributes {stable_mosaic.version = 11 : i64} {
  func.func @ecc_kernel(%arg0: memref<4xi32, #tpu.memory_space<smem>>, %arg1: memref<8xf32, #tpu.memory_space<smem>>, %arg2: memref<4x1xi32, #tpu.memory_space<vmem>>, %arg3: memref<4x128xf32, #tpu.memory_space<vmem>>, %arg4: memref<4x8xf32, #tpu.memory_space<vmem>>, %arg5: memref<8x128xf32, #tpu.memory_space<vmem>>, %arg6: memref<8x8xf32, #tpu.memory_space<vmem>>, %arg7: memref<1x2xf32, #tpu.memory_space<vmem>>, %arg8: memref<8x128xf32, #tpu.memory_space<vmem>>, %arg9: memref<8x8xf32, #tpu.memory_space<vmem>>, %arg10: memref<8xf32, #tpu.memory_space<smem>>) attributes {dimension_semantics = [], scalar_prefetch = 0 : i64, scratch_operands = 0 : i64, tpu.core_type = #tpu.core_type<tc>} {
    %c0 = arith.constant 0 : index
    %c0_0 = arith.constant 0 : index
    %0 = vector.load %arg5[%c0, %c0_0] : memref<8x128xf32, #tpu.memory_space<vmem>>, vector<8x128xf32>
    %c0_1 = arith.constant 0 : index
    %c0_2 = arith.constant 0 : index
    %1 = vector.load %arg8[%c0_1, %c0_2] : memref<8x128xf32, #tpu.memory_space<vmem>>, vector<8x128xf32>
    tpu.vector_store %arg8[%c0_1, %c0_2], %0 {strides = array<i32>} : memref<8x128xf32, #tpu.memory_space<vmem>>, vector<8x128xf32>,
    %c0_3 = arith.constant 0 : index
    %c0_4 = arith.constant 0 : index
    %2 = vector.load %arg6[%c0_3, %c0_4] : memref<8x8xf32, #tpu.memory_space<vmem>>, vector<8x8xf32>
    %c0_5 = arith.constant 0 : index
    %c0_6 = arith.constant 0 : index
    %3 = vector.load %arg9[%c0_5, %c0_6] : memref<8x8xf32, #tpu.memory_space<vmem>>, vector<8x8xf32>
    tpu.vector_store %arg9[%c0_5, %c0_6], %2 {strides = array<i32>} : memref<8x8xf32, #tpu.memory_space<vmem>>, vector<8x8xf32>,
    %c0_i32 = arith.constant 0 : i32
    %c8_i32 = arith.constant 8 : i32
    %4 = arith.addi %c0_i32, %c8_i32 : i32
    %c1_i32 = arith.constant 1 : i32
    scf.for %arg11 = %c0_i32 to %4 step %c1_i32  : i32 {
      %142 = arith.index_cast %arg11 : i32 to index
      %143 = memref.load %arg1[%142] : memref<8xf32, #tpu.memory_space<smem>>
      %144 = arith.index_cast %arg11 : i32 to index
      %145 = memref.load %arg10[%144] : memref<8xf32, #tpu.memory_space<smem>>
      memref.store %143, %arg10[%144] : memref<8xf32, #tpu.memory_space<smem>>
    }
    %c8_i32_7 = arith.constant 8 : i32
    %c0_i32_8 = arith.constant 0 : i32
    %c4_i32 = arith.constant 4 : i32
    %5 = arith.addi %c0_i32_8, %c4_i32 : i32
    %c1_i32_9 = arith.constant 1 : i32
    scf.for %arg11 = %c0_i32_8 to %5 step %c1_i32_9  : i32 {
      %142 = arith.index_cast %arg11 : i32 to index
      %143 = memref.load %arg0[%142] : memref<4xi32, #tpu.memory_space<smem>>
      %144 = arith.index_cast %143 : i32 to index
      %145 = memref.load %arg10[%144] : memref<8xf32, #tpu.memory_space<smem>>
      %cst_52 = arith.constant 1.000000e+00 : f32
      %146 = arith.addf %145, %cst_52 : f32
      %147 = arith.index_cast %143 : i32 to index
      %c0_53 = arith.constant 0 : index
      %148 = vector.load %arg8[%147, %c0_53] : memref<8x128xf32, #tpu.memory_space<vmem>>, vector<1x128xf32>
      %149 = arith.index_cast %143 : i32 to index
      %c0_54 = arith.constant 0 : index
      %150 = vector.load %arg9[%149, %c0_54] : memref<8x8xf32, #tpu.memory_space<vmem>>, vector<1x8xf32>
      %151 = arith.index_cast %arg11 : i32 to index
      %c0_55 = arith.constant 0 : index
      %152 = vector.load %arg3[%151, %c0_55] : memref<4x128xf32, #tpu.memory_space<vmem>>, vector<1x128xf32>
      %153 = arith.index_cast %arg11 : i32 to index
      %c0_56 = arith.constant 0 : index
      %154 = vector.load %arg4[%153, %c0_56] : memref<4x8xf32, #tpu.memory_space<vmem>>, vector<1x8xf32>
      %155 = vector.broadcast %145 : f32 to vector<1x128xf32>
      %156 = arith.mulf %148, %155 : vector<1x128xf32>
      %157 = arith.addf %156, %152 : vector<1x128xf32>
      %158 = vector.broadcast %146 : f32 to vector<1x128xf32>
      %159 = arith.divf %157, %158 : vector<1x128xf32>
      %160 = arith.index_cast %143 : i32 to index
      %c0_57 = arith.constant 0 : index
      %161 = vector.load %arg8[%160, %c0_57] : memref<8x128xf32, #tpu.memory_space<vmem>>, vector<1x128xf32>
      tpu.vector_store %arg8[%160, %c0_57], %159 {strides = array<i32>} : memref<8x128xf32, #tpu.memory_space<vmem>>, vector<1x128xf32>,
      %162 = vector.broadcast %145 : f32 to vector<1x8xf32>
      %163 = arith.mulf %150, %162 : vector<1x8xf32>
      %164 = arith.addf %163, %154 : vector<1x8xf32>
      %165 = vector.broadcast %146 : f32 to vector<1x8xf32>
      %166 = arith.divf %164, %165 : vector<1x8xf32>
      %167 = arith.index_cast %143 : i32 to index
      %c0_58 = arith.constant 0 : index
      %168 = vector.load %arg9[%167, %c0_58] : memref<8x8xf32, #tpu.memory_space<vmem>>, vector<1x8xf32>
      tpu.vector_store %arg9[%167, %c0_58], %166 {strides = array<i32>} : memref<8x8xf32, #tpu.memory_space<vmem>>, vector<1x8xf32>,
      %169 = arith.index_cast %143 : i32 to index
      %170 = memref.load %arg10[%169] : memref<8xf32, #tpu.memory_space<smem>>
      memref.store %146, %arg10[%169] : memref<8xf32, #tpu.memory_space<smem>>
    }
    %c4_i32_10 = arith.constant 4 : i32
    %c0_11 = arith.constant 0 : index
    %c0_12 = arith.constant 0 : index
    %6 = vector.load %arg8[%c0_11, %c0_12] : memref<8x128xf32, #tpu.memory_space<vmem>>, vector<8x128xf32>
    %c0_13 = arith.constant 0 : index
    %c0_14 = arith.constant 0 : index
    %7 = vector.load %arg9[%c0_13, %c0_14] : memref<8x8xf32, #tpu.memory_space<vmem>>, vector<8x8xf32>
    %c0_15 = arith.constant 0 : index
    %c0_16 = arith.constant 0 : index
    %8 = vector.load %arg3[%c0_15, %c0_16] : memref<4x128xf32, #tpu.memory_space<vmem>>, vector<4x128xf32>
    %c0_17 = arith.constant 0 : index
    %c0_18 = arith.constant 0 : index
    %9 = vector.load %arg4[%c0_17, %c0_18] : memref<4x8xf32, #tpu.memory_space<vmem>>, vector<4x8xf32>
    %10 = arith.mulf %6, %6 : vector<8x128xf32>
    %cst = arith.constant dense<0.000000e+00> : vector<8xf32>
    %11 = vector.multi_reduction <add>, %10, %cst [1] : vector<8x128xf32> to vector<8xf32>
    %12 = vector.shape_cast %11 : vector<8xf32> to vector<8x1xf32>
    %cst_19 = arith.constant 9.99999993E-9 : f32
    %13 = vector.broadcast %cst_19 : f32 to vector<8x1xf32>
    %14 = arith.maximumf %12, %13 : vector<8x1xf32>
    %15 = math.rsqrt %14 : vector<8x1xf32>
    %16 = vector.broadcast %15 : vector<8x1xf32> to vector<8x128xf32>
    %17 = arith.mulf %6, %16 : vector<8x128xf32>
    %cst_20 = arith.constant dense<0.000000e+00> : vector<8x8xf32>
    %18 = tpu.matmul %17, %17, %cst_20 {dimension_numbers = #tpu.dot_dimension_numbers<[1], [1], [0], [0], [0, 0, 1, 0], [], []>, precision = #tpu.contract_precision<fp32>} : vector<8x128xf32>, vector<8x128xf32>, vector<8x8xf32> -> vector<8x8xf32>
    %19 = vector.shape_cast %18 : vector<8x8xf32> to vector<1x8x8xf32>
    %cst_21 = arith.constant dense<0x7F800000> : vector<1xf32>
    %20 = vector.multi_reduction <minimumf>, %19, %cst_21 [1, 2] : vector<1x8x8xf32> to vector<1xf32>
    %21 = vector.shape_cast %20 : vector<1xf32> to vector<1x1x1xf32>
    %22 = vector.extract %21[0, 0, 0] : f32 from vector<1x1x1xf32>
    %23 = vector.shape_cast %18 : vector<8x8xf32> to vector<1x8x8xf32>
    %cst_22 = arith.constant dense<0xFF800000> : vector<1xf32>
    %24 = vector.multi_reduction <maximumf>, %23, %cst_22 [1, 2] : vector<1x8x8xf32> to vector<1xf32>
    %25 = vector.shape_cast %24 : vector<1xf32> to vector<1x1x1xf32>
    %26 = vector.extract %25[0, 0, 0] : f32 from vector<1x1x1xf32>
    %27 = vector.broadcast %22 : f32 to vector<8x8xf32>
    %28 = arith.subf %18, %27 : vector<8x8xf32>
    %29 = arith.subf %26, %22 : f32
    %30 = vector.broadcast %29 : f32 to vector<8x8xf32>
    %31 = arith.divf %28, %30 : vector<8x8xf32>
    %32 = tpu.iota {dimensions = array<i32: 0>} : vector<8x8xi32>
    %33 = tpu.iota {dimensions = array<i32: 1>} : vector<8x8xi32>
    %34 = arith.cmpi eq, %32, %33 : vector<8x8xi32>
    %cst_23 = arith.constant 0.000000e+00 : f32
    %35 = vector.broadcast %cst_23 : f32 to vector<8x8xf32>
    %36 = arith.select %34, %35, %31 : vector<8x8xi1>, vector<8x8xf32>
    %cst_24 = arith.constant dense<0xFF800000> : vector<8xf32>
    %37 = vector.multi_reduction <maximumf>, %36, %cst_24 [1] : vector<8x8xf32> to vector<8xf32>
    %38 = vector.shape_cast %37 : vector<8xf32> to vector<8x1xf32>
    %39 = vector.broadcast %38 : vector<8x1xf32> to vector<8x8xf32>
    %40 = arith.cmpf oeq, %36, %39 : vector<8x8xf32>
    %c8_i32_25 = arith.constant 8 : i32
    %41 = vector.broadcast %c8_i32_25 : i32 to vector<8x8xi32>
    %42 = arith.select %40, %33, %41 : vector<8x8xi1>, vector<8x8xi32>
    %cst_26 = arith.constant dense<2147483647> : vector<8xi32>
    %43 = vector.multi_reduction <minsi>, %42, %cst_26 [1] : vector<8x8xi32> to vector<8xi32>
    %44 = vector.shape_cast %43 : vector<8xi32> to vector<8x1xi32>
    %45 = arith.sitofp %44 : vector<8x1xi32> to vector<8x1xf32>
    %46 = tpu.concatenate %38, %45 in 1 : vector<8x1xf32>, vector<8x1xf32> -> vector<8x2xf32>
    %47 = tpu.iota {dimensions = array<i32: 1>} : vector<4x8xi32>
    %c0_27 = arith.constant 0 : index
    %c0_28 = arith.constant 0 : index
    %48 = vector.load %arg2[%c0_27, %c0_28] : memref<4x1xi32, #tpu.memory_space<vmem>>, vector<4x1xi32>
    %49 = vector.broadcast %48 : vector<4x1xi32> to vector<4x8xi32>
    %50 = arith.cmpi eq, %47, %49 : vector<4x8xi32>
    %51 = arith.extui %50 : vector<4x8xi1> to vector<4x8xi32>
    %52 = arith.sitofp %51 : vector<4x8xi32> to vector<4x8xf32>
    %cst_29 = arith.constant dense<0.000000e+00> : vector<4x128xf32>
    %53 = tpu.matmul %52, %6, %cst_29 {dimension_numbers = #tpu.dot_dimension_numbers<[1], [0], [0], [1], [0, 0, 1, 1], [], []>, precision = #tpu.contract_precision<fp32>} : vector<4x8xf32>, vector<8x128xf32>, vector<4x128xf32> -> vector<4x128xf32>
    %cst_30 = arith.constant dense<0.000000e+00> : vector<4x8xf32>
    %54 = tpu.matmul %52, %7, %cst_30 {dimension_numbers = #tpu.dot_dimension_numbers<[1], [0], [0], [1], [0, 0, 1, 1], [], []>, precision = #tpu.contract_precision<fp32>} : vector<4x8xf32>, vector<8x8xf32>, vector<4x8xf32> -> vector<4x8xf32>
    %cst_31 = arith.constant dense<0.000000e+00> : vector<4x2xf32>
    %55 = tpu.matmul %52, %46, %cst_31 {dimension_numbers = #tpu.dot_dimension_numbers<[1], [0], [0], [1], [0, 0, 1, 1], [], []>, precision = #tpu.contract_precision<fp32>} : vector<4x8xf32>, vector<8x2xf32>, vector<4x2xf32> -> vector<4x2xf32>
    %56 = vector.extract_strided_slice %55 {offsets = [0, 0], sizes = [4, 1], strides = [1, 1]} : vector<4x2xf32> to vector<4x1xf32>
    %57 = vector.extract_strided_slice %55 {offsets = [0, 1], sizes = [4, 1], strides = [1, 1]} : vector<4x2xf32> to vector<4x1xf32>
    %58 = arith.fptosi %57 : vector<4x1xf32> to vector<4x1xi32>
    %59 = vector.broadcast %58 : vector<4x1xi32> to vector<4x8xi32>
    %60 = arith.cmpi eq, %47, %59 : vector<4x8xi32>
    %61 = arith.extui %60 : vector<4x8xi1> to vector<4x8xi32>
    %62 = arith.sitofp %61 : vector<4x8xi32> to vector<4x8xf32>
    %cst_32 = arith.constant dense<0.000000e+00> : vector<4x128xf32>
    %63 = tpu.matmul %62, %6, %cst_32 {dimension_numbers = #tpu.dot_dimension_numbers<[1], [0], [0], [1], [0, 0, 1, 1], [], []>, precision = #tpu.contract_precision<fp32>} : vector<4x8xf32>, vector<8x128xf32>, vector<4x128xf32> -> vector<4x128xf32>
    %64 = arith.mulf %8, %8 : vector<4x128xf32>
    %cst_33 = arith.constant dense<0.000000e+00> : vector<4xf32>
    %65 = vector.multi_reduction <add>, %64, %cst_33 [1] : vector<4x128xf32> to vector<4xf32>
    %66 = vector.shape_cast %65 : vector<4xf32> to vector<4x1xf32>
    %67 = math.sqrt %66 : vector<4x1xf32>
    %68 = arith.mulf %53, %53 : vector<4x128xf32>
    %cst_34 = arith.constant dense<0.000000e+00> : vector<4xf32>
    %69 = vector.multi_reduction <add>, %68, %cst_34 [1] : vector<4x128xf32> to vector<4xf32>
    %70 = vector.shape_cast %69 : vector<4xf32> to vector<4x1xf32>
    %71 = math.sqrt %70 : vector<4x1xf32>
    %72 = arith.mulf %63, %63 : vector<4x128xf32>
    %cst_35 = arith.constant dense<0.000000e+00> : vector<4xf32>
    %73 = vector.multi_reduction <add>, %72, %cst_35 [1] : vector<4x128xf32> to vector<4xf32>
    %74 = vector.shape_cast %73 : vector<4xf32> to vector<4x1xf32>
    %75 = math.sqrt %74 : vector<4x1xf32>
    %76 = arith.mulf %53, %8 : vector<4x128xf32>
    %cst_36 = arith.constant dense<0.000000e+00> : vector<4xf32>
    %77 = vector.multi_reduction <add>, %76, %cst_36 [1] : vector<4x128xf32> to vector<4xf32>
    %78 = vector.shape_cast %77 : vector<4xf32> to vector<4x1xf32>
    %79 = arith.mulf %71, %67 : vector<4x1xf32>
    %cst_37 = arith.constant 9.99999993E-9 : f32
    %80 = vector.broadcast %cst_37 : f32 to vector<4x1xf32>
    %81 = arith.maximumf %79, %80 : vector<4x1xf32>
    %82 = arith.divf %78, %81 : vector<4x1xf32>
    %83 = arith.mulf %63, %8 : vector<4x128xf32>
    %cst_38 = arith.constant dense<0.000000e+00> : vector<4xf32>
    %84 = vector.multi_reduction <add>, %83, %cst_38 [1] : vector<4x128xf32> to vector<4xf32>
    %85 = vector.shape_cast %84 : vector<4xf32> to vector<4x1xf32>
    %86 = arith.mulf %75, %67 : vector<4x1xf32>
    %cst_39 = arith.constant 9.99999993E-9 : f32
    %87 = vector.broadcast %cst_39 : f32 to vector<4x1xf32>
    %88 = arith.maximumf %86, %87 : vector<4x1xf32>
    %89 = arith.divf %85, %88 : vector<4x1xf32>
    %cst_40 = arith.constant 1.000000e+00 : f32
    %90 = vector.broadcast %cst_40 : f32 to vector<4x1xf32>
    %91 = arith.subf %90, %82 : vector<4x1xf32>
    %92 = vector.shape_cast %91 : vector<4x1xf32> to vector<1x4x1xf32>
    %cst_41 = arith.constant dense<0.000000e+00> : vector<1xf32>
    %93 = vector.multi_reduction <add>, %92, %cst_41 [1, 2] : vector<1x4x1xf32> to vector<1xf32>
    %94 = vector.shape_cast %93 : vector<1xf32> to vector<1x1x1xf32>
    %95 = vector.extract %94[0, 0, 0] : f32 from vector<1x1x1xf32>
    %96 = vector.shape_cast %89 : vector<4x1xf32> to vector<1x4x1xf32>
    %cst_42 = arith.constant dense<0.000000e+00> : vector<1xf32>
    %97 = vector.multi_reduction <add>, %96, %cst_42 [1, 2] : vector<1x4x1xf32> to vector<1xf32>
    %98 = vector.shape_cast %97 : vector<1xf32> to vector<1x1x1xf32>
    %99 = vector.extract %98[0, 0, 0] : f32 from vector<1x1x1xf32>
    %100 = vector.shape_cast %56 : vector<4x1xf32> to vector<1x4x1xf32>
    %cst_43 = arith.constant dense<0.000000e+00> : vector<1xf32>
    %101 = vector.multi_reduction <add>, %100, %cst_43 [1, 2] : vector<1x4x1xf32> to vector<1xf32>
    %102 = vector.shape_cast %101 : vector<1xf32> to vector<1x1x1xf32>
    %103 = vector.extract %102[0, 0, 0] : f32 from vector<1x1x1xf32>
    %104 = arith.mulf %99, %103 : f32
    %cst_44 = arith.constant dense<0xFF800000> : vector<4xf32>
    %105 = vector.multi_reduction <maximumf>, %9, %cst_44 [1] : vector<4x8xf32> to vector<4xf32>
    %106 = vector.shape_cast %105 : vector<4xf32> to vector<4x1xf32>
    %107 = vector.broadcast %106 : vector<4x1xf32> to vector<4x8xf32>
    %108 = arith.subf %9, %107 : vector<4x8xf32>
    %109 = math.exp %108 : vector<4x8xf32>
    %cst_45 = arith.constant dense<0.000000e+00> : vector<4xf32>
    %110 = vector.multi_reduction <add>, %109, %cst_45 [1] : vector<4x8xf32> to vector<4xf32>
    %111 = vector.shape_cast %110 : vector<4xf32> to vector<4x1xf32>
    %112 = math.log %111 : vector<4x1xf32>
    %113 = arith.addf %106, %112 : vector<4x1xf32>
    %114 = vector.broadcast %113 : vector<4x1xf32> to vector<4x8xf32>
    %115 = arith.subf %9, %114 : vector<4x8xf32>
    %cst_46 = arith.constant dense<0xFF800000> : vector<4xf32>
    %116 = vector.multi_reduction <maximumf>, %54, %cst_46 [1] : vector<4x8xf32> to vector<4xf32>
    %117 = vector.shape_cast %116 : vector<4xf32> to vector<4x1xf32>
    %118 = vector.broadcast %117 : vector<4x1xf32> to vector<4x8xf32>
    %119 = arith.subf %54, %118 : vector<4x8xf32>
    %120 = math.exp %119 : vector<4x8xf32>
    %cst_47 = arith.constant dense<0.000000e+00> : vector<4xf32>
    %121 = vector.multi_reduction <add>, %120, %cst_47 [1] : vector<4x8xf32> to vector<4xf32>
    %122 = vector.shape_cast %121 : vector<4xf32> to vector<4x1xf32>
    %123 = math.log %122 : vector<4x1xf32>
    %124 = arith.addf %117, %123 : vector<4x1xf32>
    %125 = vector.broadcast %124 : vector<4x1xf32> to vector<4x8xf32>
    %126 = arith.subf %54, %125 : vector<4x8xf32>
    %127 = math.exp %126 : vector<4x8xf32>
    %128 = arith.subf %126, %115 : vector<4x8xf32>
    %129 = arith.mulf %127, %128 : vector<4x8xf32>
    %130 = vector.shape_cast %129 : vector<4x8xf32> to vector<1x4x8xf32>
    %cst_48 = arith.constant dense<0.000000e+00> : vector<1xf32>
    %131 = vector.multi_reduction <add>, %130, %cst_48 [1, 2] : vector<1x4x8xf32> to vector<1xf32>
    %132 = vector.shape_cast %131 : vector<1xf32> to vector<1x1x1xf32>
    %133 = vector.extract %132[0, 0, 0] : f32 from vector<1x1x1xf32>
    %134 = tpu.iota {dimensions = array<i32: 1>} : vector<1x2xi32>
    %c0_i32_49 = arith.constant 0 : i32
    %135 = vector.broadcast %c0_i32_49 : i32 to vector<1x2xi32>
    %136 = arith.cmpi eq, %134, %135 : vector<1x2xi32>
    %137 = arith.addf %95, %104 : f32
    %138 = vector.broadcast %137 : f32 to vector<1x2xf32>
    %139 = vector.broadcast %133 : f32 to vector<1x2xf32>
    %140 = arith.select %136, %138, %139 : vector<1x2xi1>, vector<1x2xf32>
    %c0_50 = arith.constant 0 : index
    %c0_51 = arith.constant 0 : index
    %141 = vector.load %arg7[%c0_50, %c0_51] : memref<1x2xf32, #tpu.memory_space<vmem>>, vector<1x2xf32>
    tpu.vector_store %arg7[%c0_50, %c0_51], %140 {strides = array<i32>} : memref<1x2xf32, #tpu.memory_space<vmem>>, vector<1x2xf32>,
    return
  }
}

</mosaic_0001>

<bundles_post_ra>
// kernel: ecc_loss_pallas.1
= control target key start
LH: loop header
LB: loop body
LE: loop exit
PB: predicated region body
PF: predicated region fallthrough
CT: control target
= control target key end

     0   :  { %16 = vsyncpa [#allocation4], 0  ;;  %s1526_s0 = inlined_call_operand.vmem [shape: s32[4], index: 0, kind: input, shape index: {}]   ;;  %s1527_s1 = inlined_call_operand.vmem [shape: f32[8], index: 1, kind: input, shape index: {}]   ;;  %s1528_s2 = inlined_call_operand.vmem [shape: s32[4,1], index: 2, kind: input, shape index: {}]   ;;  %s1529_s3 = inlined_call_operand.vmem [shape: f32[4,128], index: 3, kind: input, shape index: {}]   ;;  %s1530_s4 = inlined_call_operand.vmem [shape: f32[4,8], index: 4, kind: input, shape index: {}]   ;;  %s1531_s5 = inlined_call_operand.vmem [shape: f32[8,128], index: 5, kind: input, shape index: {}, may-alias: {5,8}]   ;;  %s1532_s6 = inlined_call_operand.vmem [shape: f32[8,8], index: 6, kind: input, shape index: {}, may-alias: {6,9}]   ;;  %s1533_s7 = inlined_call_operand.vmem [shape: f32[1,2], index: 7, kind: output, shape index: {0}]   ;;  %s1534_s8 = inlined_call_operand.vmem [shape: f32[8,128], index: 8, kind: output, shape index: {1}, may-alias: {5,8}]   ;;  %s1535_s9 = inlined_call_operand.vmem [shape: f32[8,8], index: 9, kind: output, shape index: {2}, may-alias: {6,9}]   ;;  %s1536_s10 = inlined_call_operand.hbm [shape: f32[8], index: 10, kind: output, shape index: {3}]  }
   0x1   :  { %17 = vsyncpa [#allocation6], 0 }
   0x2   :  { %18 = vsyncpa [#allocation3], 0  ;;  %s24_s15 = sshll.u32 %s1526_s0, 4  ;;  %s33_s18 = sshll.u32 %s1527_s1, 4  ;;  %s25_s15 = int_to_ptr.vmem [resolvable:$true] %s24_s15  ;;  %s34_s18 = int_to_ptr.vmem [resolvable:$true] %s33_s18 }
   0x3   :  { %s1308_s19 = smov [#allocation2]   ;;  %s1309_s20 = smov [#allocation5]  }
   0x4   :  { %27 = dma.vmem_to_smem %s25_s15, 16, %s1308_s19, [#allocation4]  }
   0x5   :  { %36 = dma.vmem_to_smem %s34_s18, 16, %s1309_s20, [#allocation6]  }
   0x6   :  { %1294 = dma.done.wait [#allocation4], 16  }
   0x7   :  { %1295 = vsyncadd [#allocation4], 4294967280 }
   0x8   :  { %1296 = dma.done.wait [#allocation6], 16  }
   0x9   :  { %1297 = vsyncadd [#allocation6], 4294967280 }
   0xa   :  { %55 = sfence }
   0xb   :  { %v56_v0 = vld [vmem:[%s1531_s5] sm:$0xff]  ;;  %vm59_vm0 = vcmask 64512   ;;  %s1300_s27 = smov 0  }
   0xc   :  { %v58_v1 = vld [vmem:[%s1532_s6] sm:$0xff]  ;;  %57 = vst [vmem:[%s1534_s8] sm:$0xff] %v56_v0 }
   0xd   :  { %60 = vst.msk [vmem:[%s1535_s9] sm:$0xff] %vm59_vm0, %v58_v1 }
   0xe LB: > { %s67_s28 = sld [smem:[#allocation5 + %s1302_s27]]  ;;  %s68_s5 = scalar_lea.smem [#allocation7], %s1302_s27  ;;  %s1302_s27 = sphi %s1300_s27, %s66_s27  }
   0xf   : > { %s66_s27 = sadd.s32 1, %s1302_s27  }
  0x10   : > { %p63_p0 = scmp.ge.s32.totalorder %s66_s27, 8  }
  0x11   :  { %s1388_s6 = smov (%p63_p0), 0  }
  0x12   :  { %65 = sbr.rel (!%p63_p0) target bundleno = 14 (0xe), region = 100 }
  0x14   : > { %69 = sst [smem:[%s68_s5]] %s67_s28 }
  0x17 LB: > { %s76_s29 = sld [smem:[#allocation2 + %s1306_s6]]  ;;  %s83_s21 = scalar_lea.vmem %s1529_s3, %s1306_s6  ;;  %vm110_vm5 = vcmask 57344   ;;  %s1306_s6 = sphi %s1388_s6, %s75_s6  }
  0x18   : > { %s85_s23 = scalar_lea.vmem %s1530_s4, %s1306_s6  ;;  %v84_v13 = vld [vmem:[%s83_s21] sm:$0x1]  ;;  %s75_s6 = sadd.s32 1, %s1306_s6  }
  0x19   : > { %v86_v14 = vld [vmem:[%s85_s23] sm:$0x1]  ;;  %p72_p1 = scmp.ge.s32.totalorder %s75_s6, 4  }
  0x1d   : > { %s77_s30 = sld [smem:[#allocation7 + %s76_s29]]  ;;  %s112_s12 = scalar_lea.smem [#allocation7], %s76_s29 }
  0x1e   : > { %s79_s15 = scalar_lea.vmem %s1534_s8, %s76_s29  ;;  %s81_s18 = scalar_lea.vmem %s1535_s9, %s76_s29 }
  0x1f   : > { %v80_v3 = vld [vmem:[%s79_s15] sm:$0x1] }
  0x20   : > { %v82_v5 = vld [vmem:[%s81_s18] sm:$0x1] }
  0x23   : > { %s78_s11 = sadd.f32 1.0, %s77_s30  ;;  %v87_v4 = vstv %s77_s30 }
  0x24   : > { %v88_v8 = vmul.f32 %v87_v4, %v80_v3  ;;  %v107_v10 = vmul.f32 %v87_v4, %v82_v5 }
  0x25   : > { %v90_v2 = vstv %s78_s11  ;;  %113 = sst [smem:[%s112_s12]] %s78_s11  ;;  %s1134_s11 = sshll.u32 (%p72_p1), %s1536_s10, 4  ;;  %s1135_s11 = int_to_ptr.hbm [resolvable:$true] %s1134_s11 }
  0x26   : > { %1221 = vrcp.f32 %v90_v2  ;;  %v102_v9 = vand.u32 2147483648, %v90_v2  ;;  %vm96_vm1 = vweird.f32 %v90_v2  ;;  %v100_v12 = vand.u32 2147483647, %v90_v2  ;;  %s1313_s12 = smov (%p72_p1), [#allocation7]  }
  0x27   : > { %v89_v17 = vadd.f32 %v88_v8, %v84_v13  ;;  %v108_v19 = vadd.f32 %v107_v10, %v86_v14  ;;  %1137 = dma.smem_to_hbm (%p72_p1), %s1313_s12, 16, %s1135_s11, [#allocation3]  }
  0x28   : > { %v103_v16 = vor.u32 1.1754944e-38, %v102_v9  ;;  %vm101_vm4 = vcmp.eq.f32.partialorder %v100_v12, 8.507059e+37  ;;  %v318_v9 = vlaneseq (%p72_p1) }
  0x2c   : > { %v1222_v6 = vpop.eup %1221 }
  0x2d   : > { %v92_v7 = vmul.f32 %v1222_v6, %v90_v2  ;;  %vm97_vm2 = vweird.f32 %v1222_v6 }
  0x2e   : > { %vm98_vm3 = vmor %vm96_vm1, %vm97_vm2  ;;  %vm345_vm2 = vcmask (%p72_p1), 7168  }
  0x2f   : > { %v93_v11 = vsub.f32 1.0, %v92_v7 }
  0x31   : > { %v94_v15 = vmul.f32 %v1222_v6, %v93_v11 }
  0x33   : > { %v95_v18 = vadd.f32 %v1222_v6, %v94_v15  ;;  %v319_v15 = vshrl.u32 (%p72_p1), %v318_v9, 7 }
  0x35   : > { %v99_v20 = vsel %vm98_vm3, %v1222_v6, %v95_v18  ;;  %vm952_vm3 = vcmask (%p72_p1), 1043456  }
  0x36   : > { %v104_v21 = vsel %vm101_vm4, %v103_v16, %v99_v20  ;;  %74 = sbr.rel (!%p72_p1) target bundleno = 23 (0x17), region = 111  ;;  %v1424_v16 = vand.u32 (%p72_p1), 127, %v318_v9  ;;  %vm1075_vm4 = vcmask (%p72_p1), 60416  }
  0x37   : > { %v105_v22 = vmul.f32 %v104_v21, %v89_v17  ;;  %v109_v23 = vmul.f32 %v108_v19, %v104_v21 }
  0x38   :  { %vm322_vm13 = vcmp.eq.s32.totalorder (%p72_p1), %v319_v15, %v1424_v16 }
  0x39   : > { %106 = vst [vmem:[%s79_s15] sm:$0x1] %v105_v22 }
  0x3a   : > { %111 = vst.msk [vmem:[%s81_s18] sm:$0x1] %vm110_vm5, %v109_v23 }
  0x40   :  { %v114_v24 = vld [vmem:[%s1534_s8] sm:$0xff] }
  0x41   :  { %v118_v25 = vmul.f32 %v114_v24, %v114_v24  ;;  %v1414_v38 = vand.u32 4294901760, %v114_v24 }
  0x43   :  { %119 = vadd.xlane.f32.xlu0 %v118_v25  ;;  %v1418_v42 = vsub.f32 %v114_v24, %v1414_v38  ;;  %v1310_v25 = vmov 0  }
  0x44   :  { %1223 = vset.pattern.permute.xlu2 %v1310_v25 }
  0xb6   :  { %v120_v26 = vpop.xlane.xlu0 %119 }
  0xb7   :  { %v121_v27 = vmax.f32 %v120_v26, 1e-08 }
  0xb9   :  { %1226 = vrsqrt.f32 %v121_v27  ;;  %vm128_vm7 = vweird.f32 %v121_v27 }
  0xbf   :  { %v1227_v28 = vpop.eup %1226 }
  0xc0   :  { %v123_v29 = vmul.f32 %v1227_v28, %v121_v27  ;;  %vm129_vm6 = vweird.f32 %v1227_v28 }
  0xc1   :  { %vm130_vm8 = vmor %vm128_vm7, %vm129_vm6 }
  0xc2   :  { %v124_v30 = vmul.f32 %v1227_v28, %v123_v29 }
  0xc4   :  { %v125_v31 = vmul.f32 0.5, %v124_v30 }
  0xc6   :  { %v126_v32 = vsub.f32 1.5, %v125_v31  ;;  %v347_v31 = vld [vmem:[%s1528_s2] sm:$0xf] }
  0xc8   :  { %v127_v33 = vmul.f32 %v1227_v28, %v126_v32  ;;  %v1434_v32 = vand.u32 4294901760, %v1418_v42 }
  0xca   :  { %v131_v34 = vsel %vm130_vm8, %v1227_v28, %v127_v33  ;;  %v401_v33 = vsub.f32 %v1418_v42, %v1434_v32 }
  0xcb   :  { %v132_v35 = vmul.f32 %v131_v34, %v114_v24 }
  0xcc   :  { %v402_v34 = vand.u32 4294901760, %v401_v33 }
  0xcd   :  { %v148_v36 = vand.u32 4294901760, %v132_v35 }
  0xcf   :  { %149 = vmatpush.xpose.msra.mxu0 %v148_v36  ;;  %225 = vmatpush.xpose.msra.mxu3 %v148_v36  ;;  %v151_v37 = vsub.f32 %v132_v35, %v148_v36 }
  0xd1   :  { %202 = vmatpush.xpose.msra.mxu2 %v151_v37  ;;  %v152_v39 = vand.u32 4294901760, %v151_v37 }
  0xd3   :  { %229 = vmatmul.f32.vlgmr.msra.gmra.mxu3 %v152_v39  ;;  %251 = vmatpush.xpose.msrb.mxu0 %v152_v39  ;;  %v153_v40 = vsub.f32 %v151_v37, %v152_v39 }
  0xd4   :  { %205 = vmatmul.f32.vlgmr.msra.gmra.mxu2 %v151_v37  ;;  %403 = vmatpush.msrb.mxu3 %v402_v34 }
  0xd5   :  { %373 = vmatpush.msrb.mxu2 %v1414_v38  ;;  %v154_v41 = vand.u32 4294901760, %v153_v40 }
  0xd6   :  { %497 = vmatpush.msra.mxu3 %v1414_v38 }
  0xd7   :  { %155 = vmatmul.f32.vlgmr.msra.gmra.mxu0 %v154_v41  ;;  %179 = vmatpush.xpose.msra.mxu1 %v154_v41 }
  0xd8   :  { %426 = vmatpush.msra.mxu0 %v1418_v42  ;;  %475 = vmatpush.msra.mxu2 %v1434_v32 }
  0xda   :  { %181 = vmatmul.f32.vlgmr.msra.gmra.mxu1 %v148_v36 }
  0xdb   :  { %273 = vmatpush.xpose.msrb.mxu1 %v148_v36 }
  0xdf   :  { %449 = vmatpush.msra.mxu1 %v1414_v38  ;;  %253 = vmatmul.f32.vlgmr.msrb.gmra.mxu0 %v148_v36 }
  0xe2   :  { %275 = vmatmul.f32.vlgmr.msrb.gmra.mxu1 %v148_v36  ;;  %v115_v36 = vld [vmem:[%s1535_s9] sm:$0xff] }
  0xe3   :  { %v518_v37 = vand.u32 4294901760, %v115_v36 }
  0xe5   :  { %v545_v39 = vsub.f32 %v115_v36, %v518_v37  ;;  %519 = vmatpush.msrb.mxu0 %v518_v37 }
 0x154   :  { %v156_v43 = vpop.f32.mrf.mxu0 }
 0x156   :  { %v230_v48 = vpop.f32.mrf.mxu3 }
 0x157   :  { %v182_v44 = vpop.f32.mrf.mxu1  ;;  %v206_v46 = vpop.f32.mrf.mxu2 }
 0x158   :  { %v183_v45 = vadd.f32 %v182_v44, %v156_v43  ;;  %v546_v43 = vand.u32 4294901760, %v545_v39 }
 0x15a   :  { %v207_v47 = vadd.f32 %v206_v46, %v183_v45  ;;  %v547_v45 = vsub.f32 %v545_v39, %v546_v43 }
 0x15c   :  { %v231_v49 = vadd.f32 %v230_v48, %v207_v47  ;;  %v254_v50 = vpop.f32.mrf.mxu0  ;;  %v548_v46 = vand.u32 4294901760, %v547_v45  ;;  %v1311_v48 = vmov 0.0  }
 0x15e   :  { %v255_v51 = vadd.f32 %v254_v50, %v231_v49  ;;  %549 = vmatpush.msrb.mxu1 %v548_v46 }
 0x15f   :  { %v276_v52 = vpop.f32.mrf.mxu1 }
 0x160   :  { %v277_v53 = vadd.f32 %v276_v52, %v255_v51 }
 0x162   :  { %v289_v54 = vsel %vm59_vm0, %v277_v53, -inf  ;;  %v279_v55 = vsel %vm59_vm0, %v277_v53, inf }
 0x163   :  { %290 = vmax.xlane.f32.xlu1 %v289_v54  ;;  %280 = vmin.xlane.f32.xlu0 %v279_v55 }
 0x1d6   :  { %v291_v56 = vpop.xlane.xlu1 %290  ;;  %v281_v57 = vpop.xlane.xlu0 %280 }
 0x1d7   :  { %v292_v58 = vrot.slane %v291_v56, 4  ;;  %v282_v59 = vrot.slane %v281_v57, 4 }
 0x1d9   :  { %v293_v60 = vmax.f32 %v291_v56, %v292_v58  ;;  %v283_v61 = vmin.f32 %v281_v57, %v282_v59 }
 0x1db   :  { %v294_v62 = vrot.slane %v293_v60, 2  ;;  %v284_v63 = vrot.slane %v283_v61, 2 }
 0x1dd   :  { %v285_v0 = vmin.f32 %v283_v61, %v284_v63  ;;  %v295_v1 = vmax.f32 %v293_v60, %v294_v62 }
 0x1df   :  { %v286_v2 = vrot.slane %v285_v0, 1  ;;  %v296_v3 = vrot.slane %v295_v1, 1 }
 0x1e1   :  { %v287_v4 = vmin.f32 %v285_v0, %v286_v2  ;;  %v297_v5 = vmax.f32 %v295_v1, %v296_v3 }
 0x1e3   :  { %1182 = vpush %v287_v4 }
 0x1e4   :  { %1184 = vpush %v297_v5 }
 0x214   :  { %s1183_s8 = spop %1182 }
 0x215   :  { %s1185_s25 = spop %1184  ;;  %v299_v14 = vstv %s1183_s8 }
 0x216   :  { %s301_s26 = ssub.f32 %s1185_s25, %s1183_s8  ;;  %v300_v19 = vsub.f32 %v277_v53, %v299_v14 }
 0x218   :  { %v302_v6 = vstv %s301_s26 }
 0x219   :  { %1228 = vrcp.f32 %v302_v6  ;;  %v314_v11 = vand.u32 2147483648, %v302_v6  ;;  %v312_v13 = vand.u32 2147483647, %v302_v6  ;;  %vm308_vm10 = vweird.f32 %v302_v6 }
 0x21b   :  { %v315_v18 = vor.u32 1.1754944e-38, %v314_v11  ;;  %vm313_vm12 = vcmp.eq.f32.partialorder %v312_v13, 8.507059e+37 }
 0x21f   :  { %v1229_v7 = vpop.eup %1228 }
 0x220   :  { %v304_v8 = vmul.f32 %v1229_v7, %v302_v6  ;;  %vm309_vm9 = vweird.f32 %v1229_v7 }
 0x221   :  { %vm310_vm11 = vmor %vm308_vm10, %vm309_vm9 }
 0x222   :  { %v305_v10 = vsub.f32 1.0, %v304_v8 }
 0x224   :  { %v306_v12 = vmul.f32 %v1229_v7, %v305_v10 }
 0x226   :  { %v307_v17 = vadd.f32 %v1229_v7, %v306_v12 }
 0x228   :  { %v311_v20 = vsel %vm310_vm11, %v1229_v7, %v307_v17 }
 0x229   :  { %v316_v21 = vsel %vm313_vm12, %v315_v18, %v311_v20 }
 0x22a   :  { %v317_v22 = vmul.f32 %v316_v21, %v300_v19 }
 0x22c   :  { %v323_v23 = vsel %vm322_vm13, 0.0, %v317_v22 }
 0x22d   :  { %v324_v24 = vsel %vm59_vm0, %v323_v23, -inf }
 0x22e   :  { %325 = vmax.xlane.f32.xlu1 %v324_v24 }
 0x2a1   :  { %v326_v26 = vpop.xlane.xlu1 %325 }
 0x2a2   :  { %vm327_vm14 = vcmp.eq.f32.partialorder %v323_v23, %v326_v26 }
 0x2a3   :  { %v328_v27 = vsel %vm327_vm14, %v1424_v16, 8  ;;  %vm1043_vm14 = vcmask 3072  }
 0x2a4   :  { %v329_v28 = vsel %vm59_vm0, %v328_v27, 2147483647  ;;  %v1475_v27 = vld [vmem:[%s1530_s4] sm:$0xf] }
 0x2a5   :  { %v331_v29 = vshra.s32 %v329_v28, 16  ;;  %v330_v35 = vand.u32 65535, %v329_v28 }
 0x2a7   :  { %v333_v30 = vcvt.s32.f32 %v331_v29  ;;  %v332_v41 = vcvt.s32.f32 %v330_v35  ;;  %v1076_v29 = vsel %vm1075_vm4, %v1475_v27, -inf }
 0x2a9   :  { %334 = vmin.xlane.f32.xlu2 %v333_v30 }
 0x2c1   :  { %349 = vperm.xlu2 %1223, %v347_v31  }
 0x31c   :  { %v335_v40 = vpop.xlane.xlu2 %334 }
 0x31d   :  { %vm336_vm15 = vcmp.eq.f32.partialorder %v333_v30, %v335_v40  ;;  %v341_v55 = vcvt.f32.s32 %v335_v40 }
 0x31e   :  { %v337_v44 = vsel %vm336_vm15, %v332_v41, inf }
 0x31f   :  { %338 = vmin.xlane.f32.xlu0 %v337_v44  ;;  %v342_v57 = vshll.u32 %v341_v55, 16 }
 0x324   :  { %v350_v47 = vpop.permute.xlu2 %349 }
 0x325   :  { %vm351_vm1 = vcmp.eq.s32.totalorder %v1424_v16, %v350_v47 }
 0x326   :  { %v1168_v49 = vsel %vm351_vm1, 1.0, %v1311_v48 }
 0x327   :  { %v355_v50 = vsel %vm59_vm0, %v1168_v49, 0  ;;  %1169 = vmatmul.msk.f32.vlgmr.msrb.gmra.mxu3 %vm59_vm0, %v1168_v49 }
 0x328   :  { %v375_v51 = vsub.f32 %v355_v50, %v355_v50  ;;  %595 = vmatpush.msrb.mxu3 %v518_v37 }
 0x32a   :  { %v376_v52 = vand.u32 4294901760, %v375_v51  ;;  %429 = vmatmul.f32.vlgmr.msra.gmra.mxu0 %v375_v51 }
 0x32b   :  { %621 = vmatpush.msra.mxu0 %v546_v43 }
 0x32c   :  { %v377_v53 = vsub.f32 %v375_v51, %v376_v52  ;;  %453 = vmatmul.f32.vlgmr.msra.gmra.mxu1 %v376_v52 }
 0x32d   :  { %643 = vmatpush.msra.mxu1 %v518_v37 }
 0x32e   :  { %v378_v54 = vand.u32 4294901760, %v377_v53 }
 0x32f   :  { %1171 = vmatmul.msk.f32.vlgmr.msra.gmra.mxu3 %vm59_vm0, %v1168_v49 }
 0x330   :  { %379 = vmatmul.f32.vlgmr.msrb.gmra.mxu2 %v378_v54 }
 0x331   :  { %572 = vmatpush.msrb.mxu2 %v545_v39 }
 0x332   :  { %525 = vmatmul.f32.vlgmr.msrb.gmra.mxu0 %v378_v54 }
 0x334   :  { %1172 = vmatmul.msk.f32.vlgmr.msrb.gmra.mxu1 %vm59_vm0, %v1168_v49 }
 0x337   :  { %599 = vmatmul.f32.vlgmr.msrb.gmra.mxu3 %v376_v52 }
 0x338   :  { %1170 = vmatmul.msk.f32.vlgmr.msra.gmra.mxu2 %vm59_vm0, %v1168_v49 }
 0x33a   :  { %1173 = vmatmul.msk.f32.vlgmr.msra.gmra.mxu0 %vm59_vm0, %v1168_v49 }
 0x33c   :  { %1174 = vmatmul.msk.f32.vlgmr.msra.gmra.mxu1 %vm59_vm0, %v1168_v49 }
 0x340   :  { %575 = vmatmul.f32.vlgmr.msrb.gmra.mxu2 %v375_v51 }
 0x392   :  { %v339_v56 = vpop.xlane.xlu0 %338 }
 0x393   :  { %v340_v58 = vcvt.f32.s32 %v339_v56 }
 0x395   :  { %v343_v59 = vadd.s32 %v342_v57, %v340_v58 }
 0x397   :  { %v344_v60 = vcvt.s32.f32 %v343_v59 }
 0x399   :  { %v346_v61 = vsel %vm345_vm2, %v326_v26, %v344_v60 }
 0x39a   :  { %v664_v62 = vand.u32 4294901760, %v346_v61 }
 0x39c   :  { %665 = vmatpush.msra.mxu2 %v664_v62  ;;  %741 = vmatpush.msrb.mxu1 %v664_v62  ;;  %v691_v63 = vsub.f32 %v346_v61, %v664_v62 }
 0x39d   :  { %671 = vmatmul.f32.vlgmr.msra.gmra.mxu2 %v378_v54  ;;  %745 = vmatmul.f32.vlgmr.msrb.gmra.mxu1 %v376_v52 }
 0x39e   :  { %718 = vmatpush.msrb.mxu0 %v691_v63  ;;  %v692_v0 = vand.u32 4294901760, %v691_v63  ;;  %851 = vmatpush.msra.mxu1 %v402_v34 }
 0x39f   :  { %721 = vmatmul.f32.vlgmr.msrb.gmra.mxu0 %v375_v51 }
 0x3a0   :  { %945 = vmatpush.msrb.mxu1 %v1414_v38  ;;  %767 = vmatpush.msrb.mxu2 %v692_v0  ;;  %v693_v1 = vsub.f32 %v691_v63, %v692_v0 }
 0x3a1   :  { %821 = vmatpush.msra.mxu0 %v1414_v38 }
 0x3a2   :  { %874 = vmatpush.msra.mxu2 %v1418_v42  ;;  %v694_v2 = vand.u32 4294901760, %v693_v1  ;;  %v1463_v42 = vld [vmem:[%s1529_s3] sm:$0xf] }
 0x3a3   :  { %923 = vmatpush.msrb.mxu0 %v1434_v32  ;;  %v951_v7 = vmul.f32 %v1463_v42, %v1463_v42  ;;  %v1312_v32 = vmov 1  }
 0x3a4   :  { %695 = vmatpush.msra.mxu3 %v694_v2  ;;  %1224 = vset.pattern.permute.xlu1 %v1312_v32 }
 0x3a5   :  { %1175 = vmatmul.msk.f32.vlgmr.msra.gmra.mxu3 %vm59_vm0, %v1168_v49  ;;  %1176 = vmatmul.msk.f32.vlgmr.msrb.gmra.mxu2 %vm59_vm0, %v1168_v49  ;;  %v953_v8 = vsel %vm952_vm3, %v951_v7, 0.0 }
 0x3a6   :  { %789 = vmatpush.msrb.mxu3 %v664_v62  ;;  %954 = vadd.xlane.f32.xlu2 %v953_v8 }
 0x3a7   :  { %v430_v4 = vpop.f32.mrf.mxu0  ;;  %1225 = vset.pattern.permute.xlu0 %v1312_v32 }
 0x3a8   :  { %897 = vmatpush.msra.mxu3 %v1414_v38 }
 0x3a9   :  { %v454_v6 = vpop.f32.mrf.mxu1 }
 0x3aa   :  { %v406_v3 = vpop.f32.mrf.mxu3 }
 0x3ad   :  { %1177 = vmatmul.msk.f32.vlgmr.msrb.gmra.mxu3 %vm59_vm0, %v1168_v49 }
 0x3af   :  { %v526_v10 = vpop.f32.mrf.mxu0 }
 0x3b1   :  { %v552_v11 = vpop.f32.mrf.mxu1 }
 0x3b2   :  { %v500_v9 = vpop.f32.mrf.mxu3  ;;  %v553_v12 = vadd.f32 %v552_v11, %v526_v10 }
 0x3b3   :  { %v380_v5 = vpop.f32.mrf.mxu2 }
 0x3b4   :  { %v407_v13 = vadd.f32 %v406_v3, %v380_v5 }
 0x3b6   :  { %v431_v19 = vadd.f32 %v430_v4, %v407_v13 }
 0x3b7   :  { %v624_v18 = vpop.f32.mrf.mxu0 }
 0x3b8   :  { %v455_v23 = vadd.f32 %v454_v6, %v431_v19 }
 0x3b9   :  { %v646_v21 = vpop.f32.mrf.mxu1 }
 0x3ba   :  { %v600_v15 = vpop.f32.mrf.mxu3 }
 0x3bb   :  { %v478_v38 = vpop.f32.mrf.mxu2 }
 0x3bc   :  { %v479_v26 = vadd.f32 %v478_v38, %v455_v23 }
 0x3be   :  { %v501_v28 = vadd.f32 %v500_v9, %v479_v26 }
 0x3c0   :  { %v968_v30 = vmul.f32 %v501_v28, %v501_v28  ;;  %v1000_v61 = vmul.f32 %v501_v28, %v1463_v42 }
 0x3c2   :  { %v969_v31 = vsel %vm952_vm3, %v968_v30, 0.0  ;;  %v1001_v62 = vsel %vm952_vm3, %v1000_v61, 0.0 }
 0x3c3   :  { %v576_v14 = vpop.f32.mrf.mxu2 }
 0x3c4   :  { %v577_v17 = vadd.f32 %v576_v14, %v553_v12 }
 0x3c6   :  { %v601_v20 = vadd.f32 %v600_v15, %v577_v17 }
 0x3c8   :  { %v625_v22 = vadd.f32 %v624_v18, %v601_v20 }
 0x3ca   :  { %v1468_v24 = vadd.f32 %v646_v21, %v625_v22 }
 0x3cc   :  { %v1089_v25 = vsel %vm1075_vm4, %v1468_v24, -inf }
 0x3cd   :  { %1090 = vmax.xlane.f32.xlu0 %v1089_v25 }
 0x3d5   :  { %1077 = vmax.xlane.f32.xlu0 %v1076_v29 }
 0x3dd   :  { %970 = vadd.xlane.f32.xlu0 %v969_v31 }
 0x419   :  { %v955_v63 = vpop.xlane.xlu2 %954 }
 0x41a   :  { %v746_v39 = vpop.f32.mrf.mxu1  ;;  %vm963_vm6 = vcmp.eq.f32.partialorder %v955_v63, inf  ;;  %v966_v14 = vand.u32 2147483648, %v955_v63  ;;  %vm965_vm8 = vcmp.eq.f32.partialorder %v955_v63, 0.0 }
 0x41c   :  { %v722_v36 = vpop.f32.mrf.mxu0 }
 0x420   :  { %v672_v33 = vpop.f32.mrf.mxu2 }
 0x428   :  { %v698_v34 = vpop.f32.mrf.mxu3  ;;  %v770_v41 = vpop.f32.mrf.mxu2 }
 0x429   :  { %v699_v35 = vadd.f32 %v698_v34, %v672_v33 }
 0x42b   :  { %v723_v37 = vadd.f32 %v722_v36, %v699_v35 }
 0x42d   :  { %v747_v40 = vadd.f32 %v746_v39, %v723_v37 }
 0x42f   :  { %v771_v43 = vadd.f32 %v770_v41, %v747_v40 }
 0x430   :  { %v792_v44 = vpop.f32.mrf.mxu3 }
 0x431   :  { %v1480_v45 = vadd.f32 %v792_v44, %v771_v43 }
 0x433   :  { %v1187_v46 = vceil.f32 %v1480_v45  ;;  %v1188_v47 = vfloor.f32 %v1480_v45  ;;  %vm1186_vm5 = vcmp.lt.s32.totalorder %v1480_v45, 0 }
 0x435   :  { %v1189_v49 = vsel %vm1186_vm5, %v1187_v46, %v1188_v47 }
 0x436   :  { %v1190_v50 = vcvt.f32.s32 %v1189_v49 }
 0x438   :  { %797 = vperm.xlu1 %1224, %v1190_v50  }
 0x440   :  { %v1485_v51 = vpop.xlane.xlu0 %1090 }
 0x441   :  { %v1092_v52 = vsub.f32 %v1468_v24, %v1485_v51 }
 0x443   :  { %v1093_v53 = vmul.f32 1.442695, %v1092_v52 }
 0x445   :  { %1230 = vpow2.f32 %v1093_v53 }
 0x448   :  { %v1489_v54 = vpop.xlane.xlu0 %1077 }
 0x449   :  { %v1079_v55 = vsub.f32 %v1475_v27, %v1489_v54 }
 0x44b   :  { %v1231_v56 = vpop.eup %1230  ;;  %v1080_v57 = vmul.f32 1.442695, %v1079_v55 }
 0x44c   :  { %v1095_v58 = vsel %vm1075_vm4, %v1231_v56, 0.0 }
 0x44d   :  { %1232 = vpow2.f32 %v1080_v57  ;;  %1096 = vadd.xlane.f32.xlu0 %v1095_v58 }
 0x44e   :  { %1234 = vrsqrt.f32 %v955_v63 }
 0x450   :  { %v971_v0 = vpop.xlane.xlu0 %970 }
 0x451   :  { %1236 = vrsqrt.f32 %v971_v0  ;;  %vm979_vm7 = vcmp.eq.f32.partialorder %v971_v0, inf  ;;  %v982_v15 = vand.u32 2147483648, %v971_v0  ;;  %vm981_vm9 = vcmp.eq.f32.partialorder %v971_v0, 0.0 }
 0x453   :  { %v1233_v59 = vpop.eup %1232 }
 0x454   :  { %v1082_v60 = vsel %vm1075_vm4, %v1233_v59, 0.0  ;;  %v1235_v1 = vpop.eup %1234 }
 0x455   :  { %1083 = vadd.xlane.f32.xlu0 %v1082_v60  ;;  %v957_v3 = vmul.f32 %v1235_v1, %v955_v63 }
 0x457   :  { %v1237_v2 = vpop.eup %1236  ;;  %v958_v5 = vmul.f32 %v1235_v1, %v957_v3 }
 0x458   :  { %v973_v4 = vmul.f32 %v1237_v2, %v971_v0 }
 0x459   :  { %v959_v7 = vmul.f32 0.5, %v958_v5 }
 0x45a   :  { %v974_v6 = vmul.f32 %v1237_v2, %v973_v4 }
 0x45b   :  { %v960_v9 = vsub.f32 1.5, %v959_v7 }
 0x45c   :  { %v975_v8 = vmul.f32 0.5, %v974_v6 }
 0x45d   :  { %1002 = vadd.xlane.f32.xlu0 %v1001_v62  ;;  %v961_v10 = vmul.f32 %v1235_v1, %v960_v9 }
 0x45e   :  { %v976_v38 = vsub.f32 1.5, %v975_v8 }
 0x45f   :  { %v962_v12 = vmul.f32 %v961_v10, %v955_v63 }
 0x460   :  { %v977_v11 = vmul.f32 %v1237_v2, %v976_v38 }
 0x461   :  { %v964_v17 = vsel %vm963_vm6, %v955_v63, %v962_v12  ;;  %v1064_v63 = vsel %vm1043_vm14, %v1480_v45, 0.0  ;;  %vm1116_vm6 = vcmp.eq.s32.totalorder %v1424_v16, 0 }
 0x462   :  { %v978_v13 = vmul.f32 %v977_v11, %v971_v0  ;;  %v1497_v19 = vsel %vm965_vm8, %v966_v14, %v964_v17 }
 0x464   :  { %v980_v18 = vsel %vm979_vm7, %v971_v0, %v978_v13  ;;  %vm1121_vm7 = vcmask 8192  }
 0x465   :  { %v983_v20 = vsel %vm981_vm9, %v982_v15, %v980_v18 }
 0x466   :  { %v1004_v23 = vmul.f32 %v983_v20, %v1497_v19 }
 0x468   :  { %v1005_v29 = vmax.f32 %v1004_v23, 1e-08 }
 0x46a   :  { %1238 = vrcp.f32 %v1005_v29  ;;  %vm1011_vm11 = vweird.f32 %v1005_v29  ;;  %v1017_v40 = vand.u32 2147483648, %v1005_v29  ;;  %v1015_v43 = vand.u32 2147483647, %v1005_v29 }
 0x46c   :  { %v1018_v47 = vor.u32 1.1754944e-38, %v1017_v40 }
 0x470   :  { %v1239_v32 = vpop.eup %1238 }
 0x471   :  { %v1007_v33 = vmul.f32 %v1239_v32, %v1005_v29  ;;  %vm1012_vm12 = vweird.f32 %v1239_v32 }
 0x472   :  { %vm1013_vm13 = vmor %vm1011_vm11, %vm1012_vm12 }
 0x473   :  { %v1008_v34 = vsub.f32 1.0, %v1007_v33 }
 0x475   :  { %v1009_v35 = vmul.f32 %v1239_v32, %v1008_v34 }
 0x477   :  { %v1010_v41 = vadd.f32 %v1239_v32, %v1009_v35 }
 0x479   :  { %v1014_v49 = vsel %vm1013_vm13, %v1239_v32, %v1010_v41 }
 0x4aa   :  { %v798_v21 = vpop.permute.xlu1 %797 }
 0x4ab   :  { %vm799_vm10 = vcmp.eq.s32.totalorder %v1424_v16, %v798_v21 }
 0x4ac   :  { %v1178_v22 = vsel %vm799_vm10, 1.0, %v1311_v48 }
 0x4ad   :  { %v803_v25 = vsel %vm59_vm0, %v1178_v22, 0  ;;  %1179 = vmatmul.msk.f32.vlgmr.msra.gmra.mxu1 %vm59_vm0, %v1178_v22 }
 0x4ae   :  { %v823_v26 = vsub.f32 %v803_v25, %v803_v25 }
 0x4b0   :  { %877 = vmatmul.f32.vlgmr.msra.gmra.mxu2 %v823_v26  ;;  %v824_v28 = vand.u32 4294901760, %v823_v26 }
 0x4b2   :  { %901 = vmatmul.f32.vlgmr.msra.gmra.mxu3 %v824_v28  ;;  %v825_v30 = vsub.f32 %v823_v26, %v824_v28 }
 0x4b4   :  { %v826_v31 = vand.u32 4294901760, %v825_v30 }
 0x4b5   :  { %1181 = vmatmul.msk.f32.vlgmr.msrb.gmra.mxu1 %vm59_vm0, %v1178_v22 }
 0x4b6   :  { %827 = vmatmul.f32.vlgmr.msra.gmra.mxu0 %v826_v31 }
 0x4be   :  { %1180 = vmatmul.msk.f32.vlgmr.msrb.gmra.mxu0 %vm59_vm0, %v1178_v22  ;;  %vm1016_vm0 = vcmp.eq.f32.partialorder %v1015_v43, 8.507059e+37 }
 0x4bf   :  { %v1019_v55 = vsel %vm1016_vm0, %v1018_v47, %v1014_v49 }
 0x4c0   :  { %v1097_v48 = vpop.xlane.xlu0 %1096 }
 0x4c1   :  { %1240 = vlog2.f32 %v1097_v48 }
 0x4c7   :  { %v1241_v36 = vpop.eup %1240 }
 0x4c8   :  { %v1099_v37 = vmul.f32 0.6931472, %v1241_v36  ;;  %v1084_v39 = vpop.xlane.xlu0 %1083 }
 0x4c9   :  { %1242 = vlog2.f32 %v1084_v39 }
 0x4ca   :  { %v1100_v44 = vadd.f32 %v1099_v37, %v1485_v51 }
 0x4cc   :  { %v1101_v46 = vsub.f32 %v1468_v24, %v1100_v44 }
 0x4ce   :  { %v1102_v50 = vmul.f32 1.442695, %v1101_v46 }
 0x4cf   :  { %v1243_v52 = vpop.eup %1242 }
 0x4d0   :  { %1244 = vpow2.f32 %v1102_v50  ;;  %v1086_v53 = vmul.f32 0.6931472, %v1243_v52  ;;  %v1003_v56 = vpop.xlane.xlu0 %1002 }
 0x4d1   :  { %v1020_v57 = vmul.f32 %v1019_v55, %v1003_v56 }
 0x4d2   :  { %v1087_v58 = vadd.f32 %v1086_v53, %v1489_v54 }
 0x4d3   :  { %v1042_v59 = vsub.f32 1.0, %v1020_v57 }
 0x4d4   :  { %v1088_v60 = vsub.f32 %v1475_v27, %v1087_v58 }
 0x4d5   :  { %v1044_v51 = vsel %vm1043_vm14, %v1042_v59, 0.0 }
 0x4d6   :  { %v1245_v61 = vpop.eup %1244  ;;  %1045 = vadd.xlane.f32.xlu2 %v1044_v51  ;;  %v1104_v24 = vsub.f32 %v1101_v46, %v1088_v60 }
 0x4d8   :  { %v1105_v62 = vmul.f32 %v1245_v61, %v1104_v24 }
 0x4da   :  { %v1106_v13 = vsel %vm1075_vm4, %v1105_v62, 0.0 }
 0x4de   :  { %1065 = vadd.xlane.f32.xlu2 %v1064_v63 }
 0x52a   :  { %v854_v0 = vpop.f32.mrf.mxu1 }
 0x532   :  { %v948_v7 = vpop.f32.mrf.mxu1 }
 0x533   :  { %v828_v1 = vpop.f32.mrf.mxu0  ;;  %v878_v3 = vpop.f32.mrf.mxu2 }
 0x534   :  { %v855_v2 = vadd.f32 %v854_v0, %v828_v1 }
 0x535   :  { %v902_v54 = vpop.f32.mrf.mxu3 }
 0x536   :  { %v879_v4 = vadd.f32 %v878_v3, %v855_v2 }
 0x538   :  { %v903_v5 = vadd.f32 %v902_v54, %v879_v4 }
 0x53b   :  { %v926_v6 = vpop.f32.mrf.mxu0 }
 0x53c   :  { %v927_v27 = vadd.f32 %v926_v6, %v903_v5 }
 0x53e   :  { %v949_v8 = vadd.f32 %v948_v7, %v927_v27 }
 0x540   :  { %v984_v9 = vmul.f32 %v949_v8, %v949_v8  ;;  %v1021_v38 = vmul.f32 %v949_v8, %v1463_v42 }
 0x542   :  { %v985_v10 = vsel %vm952_vm3, %v984_v9, 0.0  ;;  %v1022_v11 = vsel %vm952_vm3, %v1021_v38, 0.0 }
 0x543   :  { %986 = vadd.xlane.f32.xlu1 %v985_v10  ;;  %1023 = vadd.xlane.f32.xlu0 %v1022_v11 }
 0x549   :  { %v1046_v45 = vpop.xlane.xlu2 %1045 }
 0x54a   :  { %v1047_v12 = vrot.slane %v1046_v45, 4 }
 0x54b   :  { %1107 = vadd.xlane.f32.xlu1 %v1106_v13 }
 0x54c   :  { %v1048_v14 = vadd.f32 %v1047_v12, %v1046_v45 }
 0x54e   :  { %v1049_v15 = vrot.slane %v1048_v14, 2 }
 0x550   :  { %v1050_v17 = vadd.f32 %v1049_v15, %v1048_v14 }
 0x551   :  { %v1066_v50 = vpop.xlane.xlu2 %1065 }
 0x552   :  { %v1051_v18 = vrot.slane %v1050_v17, 1  ;;  %v1067_v53 = vrot.slane %v1066_v50, 4 }
 0x554   :  { %v1052_v20 = vadd.f32 %v1051_v18, %v1050_v17  ;;  %v1068_v56 = vadd.f32 %v1067_v53, %v1066_v50 }
 0x556   :  { %1191 = vpush %v1052_v20  ;;  %v1069_v58 = vrot.slane %v1068_v56, 2 }
 0x558   :  { %v1070_v24 = vadd.f32 %v1069_v58, %v1068_v56 }
 0x55a   :  { %v1071_v1 = vrot.slane %v1070_v24, 1 }
 0x55c   :  { %v1072_v54 = vadd.f32 %v1071_v1, %v1070_v24 }
 0x587   :  { %s1192_s10 = spop %1191 }
 0x5b6   :  { %v987_v21 = vpop.xlane.xlu1 %986  ;;  %v1024_v47 = vpop.xlane.xlu0 %1023 }
 0x5b7   :  { %1246 = vrsqrt.f32 %v987_v21  ;;  %vm995_vm15 = vcmp.eq.f32.partialorder %v987_v21, inf  ;;  %v998_v30 = vand.u32 2147483648, %v987_v21  ;;  %vm997_vm1 = vcmp.eq.f32.partialorder %v987_v21, 0.0 }
 0x5bd   :  { %v1247_v42 = vpop.eup %1246 }
 0x5be   :  { %v989_v22 = vmul.f32 %v1247_v42, %v987_v21  ;;  %v1108_v52 = vpop.xlane.xlu1 %1107 }
 0x5bf   :  { %v1109_v55 = vrot.slane %v1108_v52, 4 }
 0x5c0   :  { %v990_v23 = vmul.f32 %v1247_v42, %v989_v22 }
 0x5c1   :  { %v1110_v57 = vadd.f32 %v1109_v55, %v1108_v52 }
 0x5c2   :  { %v991_v25 = vmul.f32 0.5, %v990_v23 }
 0x5c3   :  { %v1111_v60 = vrot.slane %v1110_v57, 2 }
 0x5c4   :  { %v992_v26 = vsub.f32 1.5, %v991_v25 }
 0x5c5   :  { %v1112_v62 = vadd.f32 %v1111_v60, %v1110_v57 }
 0x5c6   :  { %v993_v28 = vmul.f32 %v1247_v42, %v992_v26 }
 0x5c7   :  { %v1113_v3 = vrot.slane %v1112_v62, 1 }
 0x5c8   :  { %v994_v29 = vmul.f32 %v993_v28, %v987_v21 }
 0x5c9   :  { %v1114_v5 = vadd.f32 %v1113_v3, %v1112_v62 }
 0x5ca   :  { %v996_v31 = vsel %vm995_vm15, %v987_v21, %v994_v29 }
 0x5cb   :  { %v999_v32 = vsel %vm997_vm1, %v998_v30, %v996_v31 }
 0x5cc   :  { %v1025_v33 = vmul.f32 %v999_v32, %v1497_v19 }
 0x5ce   :  { %v1026_v48 = vmax.f32 %v1025_v33, 1e-08 }
 0x5d0   :  { %1248 = vrcp.f32 %v1026_v48  ;;  %v1038_v37 = vand.u32 2147483648, %v1026_v48  ;;  %v1036_v40 = vand.u32 2147483647, %v1026_v48  ;;  %vm1032_vm3 = vweird.f32 %v1026_v48 }
 0x5d2   :  { %v1039_v43 = vor.u32 1.1754944e-38, %v1038_v37  ;;  %vm1037_vm5 = vcmp.eq.f32.partialorder %v1036_v40, 8.507059e+37 }
 0x5d6   :  { %v1249_v34 = vpop.eup %1248 }
 0x5d7   :  { %v1028_v35 = vmul.f32 %v1249_v34, %v1026_v48  ;;  %vm1033_vm2 = vweird.f32 %v1249_v34 }
 0x5d8   :  { %vm1034_vm4 = vmor %vm1032_vm3, %vm1033_vm2 }
 0x5d9   :  { %v1029_v36 = vsub.f32 1.0, %v1028_v35 }
 0x5db   :  { %v1030_v39 = vmul.f32 %v1249_v34, %v1029_v36 }
 0x5dd   :  { %v1031_v41 = vadd.f32 %v1249_v34, %v1030_v39 }
 0x5df   :  { %v1035_v44 = vsel %vm1034_vm4, %v1249_v34, %v1031_v41 }
 0x5e0   :  { %v1040_v46 = vsel %vm1037_vm5, %v1039_v43, %v1035_v44 }
 0x5e1   :  { %v1041_v49 = vmul.f32 %v1040_v46, %v1024_v47 }
 0x5e3   :  { %v1054_v19 = vsel %vm1043_vm14, %v1041_v49, 0.0 }
 0x5e4   :  { %1055 = vadd.xlane.f32.xlu0 %v1054_v19 }
 0x657   :  { %v1056_v59 = vpop.xlane.xlu0 %1055 }
 0x658   :  { %v1057_v51 = vrot.slane %v1056_v59, 4 }
 0x65a   :  { %v1058_v61 = vadd.f32 %v1057_v51, %v1056_v59 }
 0x65c   :  { %v1059_v63 = vrot.slane %v1058_v61, 2 }
 0x65e   :  { %v1060_v0 = vadd.f32 %v1059_v63, %v1058_v61 }
 0x660   :  { %v1061_v2 = vrot.slane %v1060_v0, 1 }
 0x662   :  { %v1062_v4 = vadd.f32 %v1061_v2, %v1060_v0 }
 0x664   :  { %1193 = vpush %v1062_v4 }
 0x665   :  { %1195 = vpush %v1072_v54 }
 0x666   :  { %1197 = vpush %v1114_v5 }
 0x695   :  { %s1194_s13 = spop %1193 }
 0x696   :  { %s1196_s14 = spop %1195 }
 0x697   :  { %s1074_s15 = smul.f32 %s1196_s14, %s1194_s13  ;;  %s1198_s16 = spop %1197 }
 0x698   :  { %v1119_v27 = vstv %s1198_s16 }
 0x699   :  { %s1117_s17 = sadd.f32 %s1192_s10, %s1074_s15 }
 0x69b   :  { %v1118_v6 = vstv %s1117_s17 }
 0x69c   :  { %v1120_v7 = vsel %vm1116_vm6, %v1118_v6, %v1119_v27 }
 0x69d   :  { %1122 = vst.msk [vmem:[%s1533_s7] sm:$0x1] %vm1121_vm7, %v1120_v7 }
 0x69e   :  { %1298 = dma.done.wait [#allocation3], 16  }
 0x69f   :  { %1299 = vsyncadd [#allocation3], 4294967280 }
 0x6a0   :  { %1148 = sfence }
 0x6a1   :  { %1149 = vsyncpa [#allocation3], 1 }
 0x6a2   :  { %1150 = vsyncpa [#allocation4], 1 }
 0x6a3   :  { %1151 = vsyncpa [#allocation6], 1 }

</bundles_post_ra>
